<compile_context>
chip_gen: v5e
topology: v5e:2x2
jax: 0.10.0
libtpu: 0.0.40
codegen_flags: <defaults>
</compile_context>

<pallas_src>
import functools

import jax
import jax.numpy as jnp
from jax.experimental import pallas as pl
from jax.experimental.pallas import tpu as pltpu


def _round_up(x: int, m: int) -> int:
    return (x + m - 1) // m * m


def _build_scatter_matrix(n: int) -> jnp.ndarray:
    """One-hot (T, N*N) matrix mapping triu-flattened entries to the full
    symmetric NxN matrix (row-major flattening of the output)."""
    t = n * (n + 1) // 2
    i = jnp.arange(n)[:, None]
    j = jnp.arange(n)[None, :]
    lo = jnp.minimum(i, j)
    hi = jnp.maximum(i, j)
    # position of (lo, hi) in row-major upper-triangular enumeration
    pos = lo * n - (lo * (lo - 1)) // 2 + (hi - lo)          # (N, N)
    pos_flat = pos.reshape(-1)                               # (N*N,)
    m = (jnp.arange(t)[:, None] == pos_flat[None, :]).astype(jnp.float32)
    return m                                                 # (T, N*N)


def _scatter_matmul_kernel(x_ref, m_ref, o_ref):
    # x_ref: (tile_rows, T), m_ref: (T, tile_cols), o_ref: (tile_rows, tile_cols)
    o_ref[...] = jnp.dot(
        x_ref[...], m_ref[...], preferred_element_type=jnp.float32
    )


def _choose_tiles(rows: int, t: int, nn: int):
    """Pick (tile_rows, tile_cols) under a conservative VMEM budget.

    Budget of 12 MiB keeps the double-buffered working set under every
    generation's default scoped-VMEM (16 MiB on v5e) and well inside v7x's
    64 MiB physical VMEM, while a 512-row tile already amortizes the ~0.35us
    per-grid-step overhead (~85% of HBM roofline in measured sweeps).
    """
    budget = 12 * 1024 * 1024
    f32 = 4

    # --- output-column tile: keep the whole N*N row if the (double-buffered)
    #     scatter-matrix block fits half the budget, else tile in multiples
    #     of 128 lanes (lane-dense stores).
    if nn <= 128 or 2 * t * nn * f32 <= budget // 2:
        tile_cols = nn
    else:
        tile_cols = min(_round_up(nn, 128), 2048)
        while tile_cols > 128 and 2 * t * tile_cols * f32 > budget // 2:
            tile_cols -= 128
    m_bytes = 2 * t * tile_cols * f32                 # double-buffered M block

    # --- row tile: target 512 (multiple of 256 for v6e/v7x MXU, of 128 for
    #     v5e), capped by remaining budget and by the row count itself.
    per_row = 2 * (t + tile_cols) * f32               # double-buffered in+out
    cap = max(8, (budget - m_bytes) // per_row)
    tile_rows = min(512, cap)
    tile_rows = max(8, (tile_rows // 8) * 8)
    if tile_rows >= 256:
        tile_rows = (tile_rows // 256) * 256
    # never use a block taller than the (8-row padded) input
    tile_rows = min(tile_rows, _round_up(rows, 8))
    return tile_rows, tile_cols


@functools.partial(jax.jit, static_argnames=("max_num_nodes", "seq_len"))
def grf_conv_unit_transpose(encoded_graph, *, max_num_nodes: int, seq_len: int):
    """encoded_graph: (B, seq_len, T) with T = N*(N+1)/2. Returns (B, S, N, N)."""
    n = max_num_nodes
    t = n * (n + 1) // 2
    nn = n * n
    b, s, t_in = encoded_graph.shape
    assert s == seq_len and t_in == t

    x = encoded_graph.reshape(b * s, t).astype(jnp.float32)
    m = _build_scatter_matrix(n)

    rows = b * s
    tile_rows, tile_cols = _choose_tiles(rows, t, nn)

    # No host-side padding: cdiv grid + Pallas ragged-tail masking handles the
    # remainder block (OOB reads padded, OOB writes dropped; rows are
    # independent so no cross-contamination).
    grid = (pl.cdiv(rows, tile_rows), pl.cdiv(nn, tile_cols))

    # TODO(synk): for very large N (N >~ 64) replace the one-hot matmul with a
    # per-tile lane gather (jnp.take over a precomputed pos table) to avoid the
    # O(N^4) scatter-matrix FLOPs/footprint entirely.
    out = pl.pallas_call(
        _scatter_matmul_kernel,
        out_shape=jax.ShapeDtypeStruct((rows, nn), jnp.float32),
        grid_spec=pltpu.PrefetchScalarGridSpec(
            num_scalar_prefetch=0,
            grid=grid,
            in_specs=[
                pl.BlockSpec((tile_rows, t), lambda i, j: (i, 0)),
                pl.BlockSpec((t, tile_cols), lambda i, j: (0, j)),
            ],
            out_specs=pl.BlockSpec((tile_rows, tile_cols), lambda i, j: (i, j)),
        ),
        compiler_params=pltpu.CompilerParams(
            dimension_semantics=("parallel", "parallel"),
            # Above v5e/v6e scoped defaults, below v7x's 64 MiB physical VMEM.
            vmem_limit_bytes=48 * 1024 * 1024,
        ),
    )(x, m)

    return out.reshape(b, s, n, n)


def _reference(encoded_graph, max_num_nodes):
    """Pure-JAX reference mirroring the PyTorch forward."""
    n = max_num_nodes
    b, s, _ = encoded_graph.shape
    iu_r, iu_c = jnp.triu_indices(n)
    adj = jnp.zeros((b, s, n, n), jnp.float32).at[:, :, iu_r, iu_c].set(
        encoded_graph.astype(jnp.float32)
    )
    strict_lower = jnp.tril(jnp.ones((n, n), jnp.float32)) - jnp.eye(
        n, dtype=jnp.float32
    )
    return adj + jnp.swapaxes(adj, -1, -2) * strict_lower


if __name__ == "__main__":
    B, S, N = 2, 8, 16
    T = N * (N + 1) // 2

    key = jax.random.PRNGKey(0)
    encoded_graph = jax.random.normal(key, (B, S, T), dtype=jnp.float32)

    out = grf_conv_unit_transpose(encoded_graph, max_num_nodes=N, seq_len=S)
    out = jax.block_until_ready(out)

    ref = _reference(encoded_graph, N)
    assert out.shape == (B, S, N, N)
    assert bool(jnp.allclose(out, ref, atol=1e-5, rtol=1e-5))
    # symmetry sanity check
    assert bool(jnp.allclose(out, jnp.swapaxes(out, -1, -2), atol=1e-5))

    print("KERNEL_OK")
</pallas_src>

<mosaic_0001>
module attributes {stable_mosaic.version = 11 : i64} {
  func.func @_scatter_matmul_kernel(%arg0: i32, %arg1: i32, %arg2: memref<16x136xf32, #tpu.memory_space<vmem>>, %arg3: memref<136x256xf32, #tpu.memory_space<vmem>>, %arg4: memref<16x256xf32, #tpu.memory_space<vmem>>) attributes {dimension_semantics = [#tpu.dimension_semantics<parallel>, #tpu.dimension_semantics<parallel>], iteration_bounds = array<i64: 1, 1>, scalar_prefetch = 0 : i64, scratch_operands = 0 : i64, tpu.core_type = #tpu.core_type<tc>, window_params = [{transform_indices = @transform_0, window_bounds = array<i64: 16, 136>}, {transform_indices = @transform_1, window_bounds = array<i64: 136, 256>}, {transform_indices = @transform_2, window_bounds = array<i64: 16, 256>}]} {
    %c0 = arith.constant 0 : index
    %c0_0 = arith.constant 0 : index
    %0 = vector.load %arg2[%c0, %c0_0] : memref<16x136xf32, #tpu.memory_space<vmem>>, vector<16x136xf32>
    %c0_1 = arith.constant 0 : index
    %c0_2 = arith.constant 0 : index
    %1 = vector.load %arg3[%c0_1, %c0_2] : memref<136x256xf32, #tpu.memory_space<vmem>>, vector<136x256xf32>
    %cst = arith.constant dense<0.000000e+00> : vector<16x256xf32>
    %2 = tpu.matmul %0, %1, %cst {dimension_numbers = #tpu.dot_dimension_numbers<[1], [0], [0], [1], [0, 0, 1, 1], [], []>} : vector<16x136xf32>, vector<136x256xf32>, vector<16x256xf32> -> vector<16x256xf32>
    %c0_3 = arith.constant 0 : index
    %c0_4 = arith.constant 0 : index
    %3 = vector.load %arg4[%c0_3, %c0_4] : memref<16x256xf32, #tpu.memory_space<vmem>>, vector<16x256xf32>
    tpu.vector_store %arg4[%c0_3, %c0_4], %2 {strides = array<i32>} : memref<16x256xf32, #tpu.memory_space<vmem>>, vector<16x256xf32>,
    return
  }
  func.func @transform_0(%arg0: i32, %arg1: i32) -> (i32, i32) {
    %c0_i32 = arith.constant 0 : i32
    %c0_i32_0 = arith.constant 0 : i32
    return %arg0, %c0_i32 : i32, i32
  }
  func.func @transform_1(%arg0: i32, %arg1: i32) -> (i32, i32) {
    %c0_i32 = arith.constant 0 : i32
    %c0_i32_0 = arith.constant 0 : i32
    return %c0_i32, %arg1 : i32, i32
  }
  func.func @transform_2(%arg0: i32, %arg1: i32) -> (i32, i32) {
    %c0_i32 = arith.constant 0 : i32
    return %arg0, %arg1 : i32, i32
  }
}

</mosaic_0001>

<bundles_post_ra>
// kernel: grf_conv_unit_transpose.1
= control target key start
LH: loop header
LB: loop body
LE: loop exit
PB: predicated region body
PF: predicated region fallthrough
CT: control target
= control target key end

     0   :  { %vm49_vm0 = vcmask 64512   ;;  %s305_s1 = inlined_call_operand.vmem [shape: f32[136,256], index: 1, kind: input, shape index: {}]   ;;  %s306_s0 = inlined_call_operand.vmem [shape: f32[16,136], index: 0, kind: input, shape index: {}]   ;;  %s307_s2 = inlined_call_operand.vmem [shape: f32[16,256], index: 2, kind: output, shape index: {}]  }
   0x1   :  { %v46_v0 = vld [vmem:[%s305_s1 + $0xf8] sm:$0xff]  ;;  %v44_v1 = vld [vmem:[%s305_s1 + $0xe8] sm:$0xff]  ;;  %v45_v2 = vld [vmem:[%s305_s1 + $0xf0] sm:$0xff] }
   0x2   :  { %102 = vmatpush.msra.mxu2 %v46_v0  ;;  %v43_v3 = vld [vmem:[%s305_s1 + $0xe0] sm:$0xff]  ;;  %v42_v4 = vld [vmem:[%s305_s1 + $0xd8] sm:$0xff]  ;;  %56 = vmatpush.msra.mxu0 %v45_v2  ;;  %v41_v5 = vld [vmem:[%s305_s1 + $0xd0] sm:$0xff] }
   0x3   :  { %v40_v6 = vld [vmem:[%s305_s1 + $0xc8] sm:$0xff]  ;;  %v39_v7 = vld [vmem:[%s305_s1 + $0xc0] sm:$0xff]  ;;  %v38_v8 = vld [vmem:[%s305_s1 + $0xb8] sm:$0xff] }
   0x4   :  { %103 = vmatpush.msra.mxu2 %v44_v1  ;;  %57 = vmatpush.msra.mxu0 %v43_v3  ;;  %v37_v9 = vld [vmem:[%s305_s1 + $0xb0] sm:$0xff]  ;;  %v36_v10 = vld [vmem:[%s305_s1 + $0xa8] sm:$0xff]  ;;  %v35_v11 = vld [vmem:[%s305_s1 + $0xa0] sm:$0xff] }
   0x5   :  { %v48_v12 = vld [vmem:[%s305_s1 + $0x108] sm:$0xff]  ;;  %v34_v13 = vld [vmem:[%s305_s1 + $0x98] sm:$0xff]  ;;  %v33_v15 = vld [vmem:[%s305_s1 + $0x90] sm:$0xff] }
   0x6   :  { %104 = vmatpush.msra.mxu2 %v42_v4  ;;  %58 = vmatpush.msra.mxu0 %v41_v5  ;;  %v12_v14 = vld [vmem:[%s306_s0 + $0x8] sm:$0xff]  ;;  %v47_v16 = vld [vmem:[%s305_s1 + $0x100] sm:$0xff]  ;;  %v30_v19 = vld [vmem:[%s305_s1 + $0x78] sm:$0xff] }
   0x7   :  { %140 = vmatpush.msra.mxu3 %v48_v12  ;;  %v32_v17 = vld [vmem:[%s305_s1 + $0x88] sm:$0xff]  ;;  %94 = vmatpush.msra.mxu1 %v47_v16  ;;  %v31_v18 = vld [vmem:[%s305_s1 + $0x80] sm:$0xff]  ;;  %v29_v20 = vld [vmem:[%s305_s1 + $0x70] sm:$0xff] }
   0x8   :  { %105 = vmatpush.msra.mxu2 %v40_v6  ;;  %59 = vmatpush.msra.mxu0 %v39_v7  ;;  %v28_v21 = vld [vmem:[%s305_s1 + $0x68] sm:$0xff]  ;;  %v14_v22 = vld [vmem:[%s306_s0 + $0x18] sm:$0xff]  ;;  %v27_v23 = vld [vmem:[%s305_s1 + $0x60] sm:$0xff] }
   0x9   :  { %158 = vmatmul.msk.f32.vlgmr.msra.gmra.mxu3 %vm49_vm0, %v12_v14  ;;  %156 = vmatmul.msk.f32.vlgmr.msra.gmra.mxu1 %vm49_vm0, %v12_v14  ;;  %v26_v24 = vld [vmem:[%s305_s1 + $0x58] sm:$0xff]  ;;  %v25_v25 = vld [vmem:[%s305_s1 + $0x50] sm:$0xff]  ;;  %v24_v26 = vld [vmem:[%s305_s1 + $0x48] sm:$0xff] }
   0xa   :  { %106 = vmatpush.msra.mxu2 %v38_v8  ;;  %60 = vmatpush.msra.mxu0 %v37_v9  ;;  %v23_v27 = vld [vmem:[%s305_s1 + $0x40] sm:$0xff]  ;;  %v22_v28 = vld [vmem:[%s305_s1 + $0x38] sm:$0xff]  ;;  %v21_v29 = vld [vmem:[%s305_s1 + $0x30] sm:$0xff] }
   0xb   :  { %v20_v30 = vld [vmem:[%s305_s1 + $0x28] sm:$0xff]  ;;  %v19_v31 = vld [vmem:[%s305_s1 + $0x20] sm:$0xff]  ;;  %v18_v32 = vld [vmem:[%s305_s1 + $0x18] sm:$0xff] }
   0xc   :  { %107 = vmatpush.msra.mxu2 %v36_v10  ;;  %61 = vmatpush.msra.mxu0 %v35_v11  ;;  %v17_v33 = vld [vmem:[%s305_s1 + $0x10] sm:$0xff]  ;;  %v16_v34 = vld [vmem:[%s305_s1 + $0x8] sm:$0xff]  ;;  %v11_v35 = vld [vmem:[%s306_s0] sm:$0xff] }
   0xd   :  { %v15_v36 = vld [vmem:[%s305_s1] sm:$0xff]  ;;  %v13_v37 = vld [vmem:[%s306_s0 + $0x10] sm:$0xff] }
   0xe   :  { %108 = vmatpush.msra.mxu2 %v34_v13  ;;  %62 = vmatpush.msra.mxu0 %v33_v15 }
  0x10   :  { %109 = vmatpush.msra.mxu2 %v32_v17  ;;  %63 = vmatpush.msra.mxu0 %v31_v18 }
  0x11   :  { %159 = vmatmul.msk.f32.gmra.mxu3 %vm49_vm0, %v14_v22  ;;  %157 = vmatmul.msk.f32.gmra.mxu1 %vm49_vm0, %v14_v22 }
  0x12   :  { %110 = vmatpush.msra.mxu2 %v30_v19  ;;  %64 = vmatpush.msra.mxu0 %v29_v20 }
  0x14   :  { %111 = vmatpush.msra.mxu2 %v28_v21  ;;  %65 = vmatpush.msra.mxu0 %v27_v23 }
  0x16   :  { %112 = vmatpush.msra.mxu2 %v26_v24  ;;  %66 = vmatpush.msra.mxu0 %v25_v25 }
  0x18   :  { %113 = vmatpush.msra.mxu2 %v24_v26  ;;  %67 = vmatpush.msra.mxu0 %v23_v27 }
  0x1a   :  { %114 = vmatpush.msra.mxu2 %v22_v28  ;;  %68 = vmatpush.msra.mxu0 %v21_v29 }
  0x1c   :  { %115 = vmatpush.msra.mxu2 %v20_v30  ;;  %69 = vmatpush.msra.mxu0 %v19_v31 }
  0x1e   :  { %116 = vmatpush.msra.mxu2 %v18_v32  ;;  %70 = vmatpush.msra.mxu0 %v17_v33 }
  0x20   :  { %117 = vmatpush.msra.mxu2 %v16_v34  ;;  %71 = vmatpush.msra.mxu0 %v15_v36 }
  0x21   :  { %118 = vmatmul.f32.vlgmr.msra.gmra.mxu2 %v11_v35  ;;  %72 = vmatmul.f32.vlgmr.msra.gmra.mxu0 %v11_v35 }
  0x29   :  { %121 = vmatmul.f32.gmra.mxu2 %v13_v37  ;;  %75 = vmatmul.f32.gmra.mxu0 %v13_v37 }
  0x86   :  { %v96_v38 = vpop.f32.mrf.mxu1 }
  0x8c   :  { %v142_v41 = vpop.f32.mrf.mxu3 }
  0x8e   :  { %v99_v44 = vpop.f32.mrf.mxu1 }
  0x94   :  { %v145_v47 = vpop.f32.mrf.mxu3 }
  0x9e   :  { %v73_v39 = vpop.f32.mrf.mxu0 }
  0x9f   :  { %v97_v40 = vadd.f32 %v96_v38, %v73_v39 }
  0xa1   :  { %148 = vst [vmem:[%s307_s2] sm:$0xff] %v97_v40 }
  0xa4   :  { %v119_v42 = vpop.f32.mrf.mxu2 }
  0xa5   :  { %v143_v43 = vadd.f32 %v142_v41, %v119_v42 }
  0xa6   :  { %v76_v45 = vpop.f32.mrf.mxu0 }
  0xa7   :  { %149 = vst [vmem:[%s307_s2 + $0x8] sm:$0xff] %v143_v43  ;;  %v100_v46 = vadd.f32 %v99_v44, %v76_v45 }
  0xa9   :  { %150 = vst [vmem:[%s307_s2 + $0x10] sm:$0xff] %v100_v46 }
  0xac   :  { %v122_v48 = vpop.f32.mrf.mxu2 }
  0xad   :  { %v146_v49 = vadd.f32 %v145_v47, %v122_v48 }
  0xaf   :  { %151 = vst [vmem:[%s307_s2 + $0x18] sm:$0xff] %v146_v49 }

</bundles_post_ra>
